<compile_context>
chip_gen: v6e
topology: v6e:2x2x1
jax: 0.10.0
libtpu: 0.0.40
codegen_flags: <defaults>
</compile_context>

<pallas_src>
import functools

import jax
import jax.numpy as jnp
from jax.experimental import pallas as pl
from jax.experimental.pallas import tpu as pltpu

BIG = 1e30  # additive mask magnitude for non-edges


def _gat_layer(x, adj_bias, p, *, fin, heads, f_max, w_max, apply_relu):
    """One GATConv layer on in-kernel values (pure 2-D math, heads unrolled)."""
    bias_row = f_max
    att_row = f_max + 1
    mask_row = att_row + w_max

    w = p[:fin, :]                                    # [fin, Wmax]
    b = p[bias_row:bias_row + 1, :]                   # [1, Wmax]
    amat = p[att_row:att_row + w_max, :2 * heads]     # [Wmax, 2H] block-diag att

    # Linear transform and fused attention logits, both on the MXU.
    h = jnp.dot(x, w, preferred_element_type=jnp.float32)       # [N, Wmax]
    al = jnp.dot(h, amat, preferred_element_type=jnp.float32)   # [N, 2H]
    alT = al.T                                                  # [2H, N] tiny transpose

    o = None
    for hd in range(heads):                    # heads static & tiny -> unrolled
        dst = al[:, hd:hd + 1]                 # [N, 1] target logits (column)
        src = alT[heads + hd:heads + hd + 1, :]  # [1, N] source logits (row)
        e = dst + src                          # [N, N]
        e = jnp.where(e > 0, e, 0.2 * e)       # LeakyReLU(negative_slope=0.2)
        e = e + adj_bias                       # additive edge mask (0 / -1e30)
        e = e - jnp.max(e, axis=-1, keepdims=True)
        pexp = jnp.exp(e)                      # masked entries underflow to 0
        alpha = pexp * pl.reciprocal(
            jnp.sum(pexp, axis=-1, keepdims=True), approx=True)
        # Head-masked aggregation: no lane slices / concats of h.
        hm = h * p[mask_row + hd:mask_row + hd + 1, :]           # zero other heads
        contrib = jnp.dot(alpha, hm, preferred_element_type=jnp.float32)
        o = contrib if o is None else o + contrib
    o = o + b
    if apply_relu:
        o = jnp.maximum(o, 0.0)
    return o


def gat_net_kernel(x_ref, adjb_ref, prm_ref, out_ref, *, cfgs, f_max, w_max, out_dim):
    """Whole Net fused; one grid step = one graph of the batch."""
    adj_bias = adjb_ref[...]          # [N, N]
    prm = prm_ref[...]                # [L, R, Wmax] (~7 KB)
    x = x_ref[0]                      # [N, F0]
    for li, (fin, heads, apply_relu) in enumerate(cfgs):
        x = _gat_layer(x, adj_bias, prm[li], fin=fin, heads=heads,
                       f_max=f_max, w_max=w_max, apply_relu=apply_relu)
        # TODO(synk): F.dropout(training=True) not implemented; eval mode only.
    out_ref[0] = x[:, :out_dim].astype(out_ref.dtype)


def pack_params(layer_params, layer_cfgs, in_dims, f_max, w_max, h_max):
    """Pack all layer params into one slab [L, f_max+1+w_max+h_max, w_max]."""
    rows = f_max + 1 + w_max + h_max
    slab = jnp.zeros((len(layer_params), rows, w_max), jnp.float32)
    for li, (prm, (h, c), fin) in enumerate(zip(layer_params, layer_cfgs, in_dims)):
        hc = h * c
        slab = slab.at[li, :fin, :hc].set(prm["W"])                  # W rows
        slab = slab.at[li, f_max, :hc].set(prm["bias"].reshape(-1))  # bias row
        for hd in range(h):
            r0 = f_max + 1 + hd * c
            slab = slab.at[li, r0:r0 + c, hd].set(prm["att_dst"][hd])      # dst col
            slab = slab.at[li, r0:r0 + c, h + hd].set(prm["att_src"][hd])  # src col
            slab = slab.at[li, f_max + 1 + w_max + hd,
                           hd * c:(hd + 1) * c].set(1.0)                   # head mask
    return slab


def net_forward(x, adj, layer_params, layer_cfgs):
    """Mirrors Net.forward over a batch of graphs sharing one adjacency.

    x: [B, N, F0] node features per graph/window, adj: [N, N] dense mask
    (adj[target, source] = 1, self loops included)."""
    B, N, F0 = x.shape
    L = len(layer_cfgs)
    in_dims = [F0] + [h * c for h, c in layer_cfgs[:-1]]
    f_max = max(in_dims)
    w_max = max(h * c for h, c in layer_cfgs)
    h_max = max(h for h, _ in layer_cfgs)
    out_dim = layer_cfgs[-1][0] * layer_cfgs[-1][1]

    slab = pack_params(layer_params, layer_cfgs, in_dims, f_max, w_max, h_max)
    adj_bias = (adj - 1.0) * BIG      # 0 on edges / self loops, -1e30 elsewhere

    cfgs = tuple((in_dims[i], h, i < L - 1)
                 for i, (h, c) in enumerate(layer_cfgs))
    kernel = functools.partial(gat_net_kernel, cfgs=cfgs,
                               f_max=f_max, w_max=w_max, out_dim=out_dim)

    heads_total = sum(h for h, _ in layer_cfgs)
    flops = B * (2 * N * sum(in_dims) * w_max          # x @ W
                 + 2 * N * w_max * 2 * h_max * L       # logits h @ A
                 + 2 * N * N * w_max * heads_total     # aggregation
                 + 12 * N * N * heads_total)           # softmax chain
    cost = pl.CostEstimate(
        flops=int(flops),
        transcendentals=int(B * heads_total * N * N),
        bytes_accessed=int(4 * (x.size + adj.size + slab.size + B * N * out_dim)))

    return pl.pallas_call(
        kernel,
        out_shape=jax.ShapeDtypeStruct((B, N, out_dim), jnp.float32),
        grid=(B,),
        in_specs=[
            pl.BlockSpec((1, N, F0), lambda b: (b, 0, 0)),       # per-graph features
            pl.BlockSpec((N, N), lambda b: (0, 0)),              # shared adjacency bias
            pl.BlockSpec(slab.shape, lambda b: (0, 0, 0)),       # shared param slab
        ],
        out_specs=pl.BlockSpec((1, N, out_dim), lambda b: (b, 0, 0)),
        compiler_params=pltpu.CompilerParams(dimension_semantics=("parallel",)),
        cost_estimate=cost,
    )(x, adj_bias, slab)


def init_gat_params(key, in_ch, out_ch, heads):
    k1, k2, k3 = jax.random.split(key, 3)
    scale = 1.0 / jnp.sqrt(jnp.float32(in_ch))
    return dict(
        W=jax.random.normal(k1, (in_ch, heads * out_ch), jnp.float32) * scale,
        att_src=jax.random.normal(k2, (heads, out_ch), jnp.float32) * 0.1,
        att_dst=jax.random.normal(k3, (heads, out_ch), jnp.float32) * 0.1,
        bias=jnp.zeros((1, heads * out_ch), jnp.float32),
    )


if __name__ == "__main__":
    window = 15
    num_additional_features = 3
    num_original_features = window
    num_hidden_channels = 8
    num_layers = 3
    num_heads = 2
    N = 16   # nodes per graph
    B = 8    # batch of feature windows over the same graph

    key = jax.random.PRNGKey(0)
    kx, kp = jax.random.split(key)
    x = jax.random.normal(
        kx, (B, N, num_original_features + num_additional_features), jnp.float32)

    # Deterministic bidirectional ring graph; adj[target, source] with self loops
    # (GATConv default add_self_loops=True) -> no all-zero softmax rows.
    src = jnp.arange(N, dtype=jnp.int32)
    dst = jnp.roll(src, -1)
    edge_index = jnp.stack([jnp.concatenate([src, dst]),
                            jnp.concatenate([dst, src])], axis=0)
    adj = jnp.zeros((N, N), jnp.float32)
    adj = adj.at[edge_index[1], edge_index[0]].set(1.0)
    adj = adj.at[jnp.arange(N), jnp.arange(N)].set(1.0)

    # Layer configs (heads, out_channels) matching the torch module:
    #   GATConv(18, hidden, heads=H), [GATConv(hidden*H, hidden, heads=H)]*(L-2),
    #   GATConv(hidden*H, 15)  (heads=1).
    cfgs = [(num_heads, num_hidden_channels)]
    for _ in range(num_layers - 2):
        cfgs.append((num_heads, num_hidden_channels))
    cfgs.append((1, num_original_features))

    in_dims = [num_original_features + num_additional_features] + \
              [h * c for h, c in cfgs[:-1]]
    keys = jax.random.split(kp, len(cfgs))
    params = [init_gat_params(k, d, c, h)
              for k, d, (h, c) in zip(keys, in_dims, cfgs)]

    out = net_forward(x, adj, params, cfgs)
    jax.block_until_ready(out)
    assert out.shape == (B, N, num_original_features)
    print("KERNEL_OK")
</pallas_src>

<mosaic_0001>
module attributes {stable_mosaic.version = 11 : i64} {
  func.func @gat_net_kernel(%arg0: i32, %arg1: memref<1x16x18xf32, #tpu.memory_space<vmem>>, %arg2: memref<16x16xf32, #tpu.memory_space<vmem>>, %arg3: memref<3x37x16xf32, #tpu.memory_space<vmem>>, %arg4: memref<1x16x15xf32, #tpu.memory_space<vmem>>) attributes {dimension_semantics = [#tpu.dimension_semantics<parallel>], iteration_bounds = array<i64: 8>, scalar_prefetch = 0 : i64, scratch_operands = 0 : i64, tpu.core_type = #tpu.core_type<tc>, window_params = [{transform_indices = @transform_0, window_bounds = array<i64: 1, 16, 18>}, {pipeline_mode = #tpu.pipeline_mode<synchronous>, transform_indices = @transform_1, window_bounds = array<i64: 16, 16>}, {pipeline_mode = #tpu.pipeline_mode<synchronous>, transform_indices = @transform_2, window_bounds = array<i64: 3, 37, 16>}, {transform_indices = @transform_3, window_bounds = array<i64: 1, 16, 15>}]} {
    %c0 = arith.constant 0 : index
    %c0_0 = arith.constant 0 : index
    %0 = vector.load %arg2[%c0, %c0_0] : memref<16x16xf32, #tpu.memory_space<vmem>>, vector<16x16xf32>
    %c0_1 = arith.constant 0 : index
    %c0_2 = arith.constant 0 : index
    %c0_3 = arith.constant 0 : index
    %1 = vector.load %arg3[%c0_1, %c0_2, %c0_3] : memref<3x37x16xf32, #tpu.memory_space<vmem>>, vector<3x37x16xf32>
    %c0_4 = arith.constant 0 : index
    %c0_5 = arith.constant 0 : index
    %c0_6 = arith.constant 0 : index
    %2 = vector.load %arg1[%c0_4, %c0_5, %c0_6] : memref<1x16x18xf32, #tpu.memory_space<vmem>>, vector<1x16x18xf32>
    %3 = vector.shape_cast %2 : vector<1x16x18xf32> to vector<16x18xf32>
    %4 = vector.extract_strided_slice %1 {offsets = [0, 0, 0], sizes = [1, 37, 16], strides = [1, 1, 1]} : vector<3x37x16xf32> to vector<1x37x16xf32>
    %5 = vector.shape_cast %4 : vector<1x37x16xf32> to vector<37x16xf32>
    %6 = vector.extract_strided_slice %5 {offsets = [0, 0], sizes = [18, 16], strides = [1, 1]} : vector<37x16xf32> to vector<18x16xf32>
    %7 = vector.extract_strided_slice %5 {offsets = [18, 0], sizes = [1, 16], strides = [1, 1]} : vector<37x16xf32> to vector<1x16xf32>
    %8 = vector.extract_strided_slice %5 {offsets = [19, 0], sizes = [16, 4], strides = [1, 1]} : vector<37x16xf32> to vector<16x4xf32>
    %cst = arith.constant dense<0.000000e+00> : vector<16x16xf32>
    %9 = tpu.matmul %3, %6, %cst {dimension_numbers = #tpu.dot_dimension_numbers<[1], [0], [0], [1], [0, 0, 1, 1], [], []>} : vector<16x18xf32>, vector<18x16xf32>, vector<16x16xf32> -> vector<16x16xf32>
    %cst_7 = arith.constant dense<0.000000e+00> : vector<16x4xf32>
    %10 = tpu.matmul %9, %8, %cst_7 {dimension_numbers = #tpu.dot_dimension_numbers<[1], [0], [0], [1], [0, 0, 1, 1], [], []>} : vector<16x16xf32>, vector<16x4xf32>, vector<16x4xf32> -> vector<16x4xf32>
    %11 = tpu.transpose %10, [1, 0] : vector<16x4xf32> -> vector<4x16xf32>
    %12 = vector.extract_strided_slice %10 {offsets = [0, 0], sizes = [16, 1], strides = [1, 1]} : vector<16x4xf32> to vector<16x1xf32>
    %13 = vector.extract_strided_slice %11 {offsets = [2, 0], sizes = [1, 16], strides = [1, 1]} : vector<4x16xf32> to vector<1x16xf32>
    %14 = vector.broadcast %12 : vector<16x1xf32> to vector<16x16xf32>
    %15 = vector.broadcast %13 : vector<1x16xf32> to vector<16x16xf32>
    %16 = arith.addf %14, %15 : vector<16x16xf32>
    %cst_8 = arith.constant 0.000000e+00 : f32
    %17 = vector.broadcast %cst_8 : f32 to vector<16x16xf32>
    %18 = arith.cmpf ogt, %16, %17 : vector<16x16xf32>
    %cst_9 = arith.constant 2.000000e-01 : f32
    %19 = vector.broadcast %cst_9 : f32 to vector<16x16xf32>
    %20 = arith.mulf %19, %16 : vector<16x16xf32>
    %21 = arith.select %18, %16, %20 : vector<16x16xi1>, vector<16x16xf32>
    %22 = arith.addf %21, %0 : vector<16x16xf32>
    %cst_10 = arith.constant dense<0xFF800000> : vector<16xf32>
    %23 = vector.multi_reduction <maximumf>, %22, %cst_10 [1] : vector<16x16xf32> to vector<16xf32>
    %24 = vector.shape_cast %23 : vector<16xf32> to vector<16x1xf32>
    %25 = vector.broadcast %24 : vector<16x1xf32> to vector<16x16xf32>
    %26 = arith.subf %22, %25 : vector<16x16xf32>
    %27 = math.exp %26 : vector<16x16xf32>
    %cst_11 = arith.constant dense<0.000000e+00> : vector<16xf32>
    %28 = vector.multi_reduction <add>, %27, %cst_11 [1] : vector<16x16xf32> to vector<16xf32>
    %29 = vector.shape_cast %28 : vector<16xf32> to vector<16x1xf32>
    %30 = tpu.reciprocal %29 {approx = true} : vector<16x1xf32> -> vector<16x1xf32>
    %31 = vector.broadcast %30 : vector<16x1xf32> to vector<16x16xf32>
    %32 = arith.mulf %27, %31 : vector<16x16xf32>
    %33 = vector.extract_strided_slice %5 {offsets = [35, 0], sizes = [1, 16], strides = [1, 1]} : vector<37x16xf32> to vector<1x16xf32>
    %34 = vector.broadcast %33 : vector<1x16xf32> to vector<16x16xf32>
    %35 = arith.mulf %9, %34 : vector<16x16xf32>
    %cst_12 = arith.constant dense<0.000000e+00> : vector<16x16xf32>
    %36 = tpu.matmul %32, %35, %cst_12 {dimension_numbers = #tpu.dot_dimension_numbers<[1], [0], [0], [1], [0, 0, 1, 1], [], []>} : vector<16x16xf32>, vector<16x16xf32>, vector<16x16xf32> -> vector<16x16xf32>
    %37 = vector.extract_strided_slice %10 {offsets = [0, 1], sizes = [16, 1], strides = [1, 1]} : vector<16x4xf32> to vector<16x1xf32>
    %38 = vector.extract_strided_slice %11 {offsets = [3, 0], sizes = [1, 16], strides = [1, 1]} : vector<4x16xf32> to vector<1x16xf32>
    %39 = vector.broadcast %37 : vector<16x1xf32> to vector<16x16xf32>
    %40 = vector.broadcast %38 : vector<1x16xf32> to vector<16x16xf32>
    %41 = arith.addf %39, %40 : vector<16x16xf32>
    %cst_13 = arith.constant 0.000000e+00 : f32
    %42 = vector.broadcast %cst_13 : f32 to vector<16x16xf32>
    %43 = arith.cmpf ogt, %41, %42 : vector<16x16xf32>
    %cst_14 = arith.constant 2.000000e-01 : f32
    %44 = vector.broadcast %cst_14 : f32 to vector<16x16xf32>
    %45 = arith.mulf %44, %41 : vector<16x16xf32>
    %46 = arith.select %43, %41, %45 : vector<16x16xi1>, vector<16x16xf32>
    %47 = arith.addf %46, %0 : vector<16x16xf32>
    %cst_15 = arith.constant dense<0xFF800000> : vector<16xf32>
    %48 = vector.multi_reduction <maximumf>, %47, %cst_15 [1] : vector<16x16xf32> to vector<16xf32>
    %49 = vector.shape_cast %48 : vector<16xf32> to vector<16x1xf32>
    %50 = vector.broadcast %49 : vector<16x1xf32> to vector<16x16xf32>
    %51 = arith.subf %47, %50 : vector<16x16xf32>
    %52 = math.exp %51 : vector<16x16xf32>
    %cst_16 = arith.constant dense<0.000000e+00> : vector<16xf32>
    %53 = vector.multi_reduction <add>, %52, %cst_16 [1] : vector<16x16xf32> to vector<16xf32>
    %54 = vector.shape_cast %53 : vector<16xf32> to vector<16x1xf32>
    %55 = tpu.reciprocal %54 {approx = true} : vector<16x1xf32> -> vector<16x1xf32>
    %56 = vector.broadcast %55 : vector<16x1xf32> to vector<16x16xf32>
    %57 = arith.mulf %52, %56 : vector<16x16xf32>
    %58 = vector.extract_strided_slice %5 {offsets = [36, 0], sizes = [1, 16], strides = [1, 1]} : vector<37x16xf32> to vector<1x16xf32>
    %59 = vector.broadcast %58 : vector<1x16xf32> to vector<16x16xf32>
    %60 = arith.mulf %9, %59 : vector<16x16xf32>
    %cst_17 = arith.constant dense<0.000000e+00> : vector<16x16xf32>
    %61 = tpu.matmul %57, %60, %cst_17 {dimension_numbers = #tpu.dot_dimension_numbers<[1], [0], [0], [1], [0, 0, 1, 1], [], []>} : vector<16x16xf32>, vector<16x16xf32>, vector<16x16xf32> -> vector<16x16xf32>
    %62 = arith.addf %36, %61 : vector<16x16xf32>
    %63 = vector.broadcast %7 : vector<1x16xf32> to vector<16x16xf32>
    %64 = arith.addf %62, %63 : vector<16x16xf32>
    %cst_18 = arith.constant 0.000000e+00 : f32
    %65 = vector.broadcast %cst_18 : f32 to vector<16x16xf32>
    %66 = arith.maximumf %64, %65 : vector<16x16xf32>
    %67 = vector.extract_strided_slice %1 {offsets = [1, 0, 0], sizes = [1, 37, 16], strides = [1, 1, 1]} : vector<3x37x16xf32> to vector<1x37x16xf32>
    %68 = vector.shape_cast %67 : vector<1x37x16xf32> to vector<37x16xf32>
    %69 = vector.extract_strided_slice %68 {offsets = [0, 0], sizes = [16, 16], strides = [1, 1]} : vector<37x16xf32> to vector<16x16xf32>
    %70 = vector.extract_strided_slice %68 {offsets = [18, 0], sizes = [1, 16], strides = [1, 1]} : vector<37x16xf32> to vector<1x16xf32>
    %71 = vector.extract_strided_slice %68 {offsets = [19, 0], sizes = [16, 4], strides = [1, 1]} : vector<37x16xf32> to vector<16x4xf32>
    %cst_19 = arith.constant dense<0.000000e+00> : vector<16x16xf32>
    %72 = tpu.matmul %66, %69, %cst_19 {dimension_numbers = #tpu.dot_dimension_numbers<[1], [0], [0], [1], [0, 0, 1, 1], [], []>} : vector<16x16xf32>, vector<16x16xf32>, vector<16x16xf32> -> vector<16x16xf32>
    %cst_20 = arith.constant dense<0.000000e+00> : vector<16x4xf32>
    %73 = tpu.matmul %72, %71, %cst_20 {dimension_numbers = #tpu.dot_dimension_numbers<[1], [0], [0], [1], [0, 0, 1, 1], [], []>} : vector<16x16xf32>, vector<16x4xf32>, vector<16x4xf32> -> vector<16x4xf32>
    %74 = tpu.transpose %73, [1, 0] : vector<16x4xf32> -> vector<4x16xf32>
    %75 = vector.extract_strided_slice %73 {offsets = [0, 0], sizes = [16, 1], strides = [1, 1]} : vector<16x4xf32> to vector<16x1xf32>
    %76 = vector.extract_strided_slice %74 {offsets = [2, 0], sizes = [1, 16], strides = [1, 1]} : vector<4x16xf32> to vector<1x16xf32>
    %77 = vector.broadcast %75 : vector<16x1xf32> to vector<16x16xf32>
    %78 = vector.broadcast %76 : vector<1x16xf32> to vector<16x16xf32>
    %79 = arith.addf %77, %78 : vector<16x16xf32>
    %cst_21 = arith.constant 0.000000e+00 : f32
    %80 = vector.broadcast %cst_21 : f32 to vector<16x16xf32>
    %81 = arith.cmpf ogt, %79, %80 : vector<16x16xf32>
    %cst_22 = arith.constant 2.000000e-01 : f32
    %82 = vector.broadcast %cst_22 : f32 to vector<16x16xf32>
    %83 = arith.mulf %82, %79 : vector<16x16xf32>
    %84 = arith.select %81, %79, %83 : vector<16x16xi1>, vector<16x16xf32>
    %85 = arith.addf %84, %0 : vector<16x16xf32>
    %cst_23 = arith.constant dense<0xFF800000> : vector<16xf32>
    %86 = vector.multi_reduction <maximumf>, %85, %cst_23 [1] : vector<16x16xf32> to vector<16xf32>
    %87 = vector.shape_cast %86 : vector<16xf32> to vector<16x1xf32>
    %88 = vector.broadcast %87 : vector<16x1xf32> to vector<16x16xf32>
    %89 = arith.subf %85, %88 : vector<16x16xf32>
    %90 = math.exp %89 : vector<16x16xf32>
    %cst_24 = arith.constant dense<0.000000e+00> : vector<16xf32>
    %91 = vector.multi_reduction <add>, %90, %cst_24 [1] : vector<16x16xf32> to vector<16xf32>
    %92 = vector.shape_cast %91 : vector<16xf32> to vector<16x1xf32>
    %93 = tpu.reciprocal %92 {approx = true} : vector<16x1xf32> -> vector<16x1xf32>
    %94 = vector.broadcast %93 : vector<16x1xf32> to vector<16x16xf32>
    %95 = arith.mulf %90, %94 : vector<16x16xf32>
    %96 = vector.extract_strided_slice %68 {offsets = [35, 0], sizes = [1, 16], strides = [1, 1]} : vector<37x16xf32> to vector<1x16xf32>
    %97 = vector.broadcast %96 : vector<1x16xf32> to vector<16x16xf32>
    %98 = arith.mulf %72, %97 : vector<16x16xf32>
    %cst_25 = arith.constant dense<0.000000e+00> : vector<16x16xf32>
    %99 = tpu.matmul %95, %98, %cst_25 {dimension_numbers = #tpu.dot_dimension_numbers<[1], [0], [0], [1], [0, 0, 1, 1], [], []>} : vector<16x16xf32>, vector<16x16xf32>, vector<16x16xf32> -> vector<16x16xf32>
    %100 = vector.extract_strided_slice %73 {offsets = [0, 1], sizes = [16, 1], strides = [1, 1]} : vector<16x4xf32> to vector<16x1xf32>
    %101 = vector.extract_strided_slice %74 {offsets = [3, 0], sizes = [1, 16], strides = [1, 1]} : vector<4x16xf32> to vector<1x16xf32>
    %102 = vector.broadcast %100 : vector<16x1xf32> to vector<16x16xf32>
    %103 = vector.broadcast %101 : vector<1x16xf32> to vector<16x16xf32>
    %104 = arith.addf %102, %103 : vector<16x16xf32>
    %cst_26 = arith.constant 0.000000e+00 : f32
    %105 = vector.broadcast %cst_26 : f32 to vector<16x16xf32>
    %106 = arith.cmpf ogt, %104, %105 : vector<16x16xf32>
    %cst_27 = arith.constant 2.000000e-01 : f32
    %107 = vector.broadcast %cst_27 : f32 to vector<16x16xf32>
    %108 = arith.mulf %107, %104 : vector<16x16xf32>
    %109 = arith.select %106, %104, %108 : vector<16x16xi1>, vector<16x16xf32>
    %110 = arith.addf %109, %0 : vector<16x16xf32>
    %cst_28 = arith.constant dense<0xFF800000> : vector<16xf32>
    %111 = vector.multi_reduction <maximumf>, %110, %cst_28 [1] : vector<16x16xf32> to vector<16xf32>
    %112 = vector.shape_cast %111 : vector<16xf32> to vector<16x1xf32>
    %113 = vector.broadcast %112 : vector<16x1xf32> to vector<16x16xf32>
    %114 = arith.subf %110, %113 : vector<16x16xf32>
    %115 = math.exp %114 : vector<16x16xf32>
    %cst_29 = arith.constant dense<0.000000e+00> : vector<16xf32>
    %116 = vector.multi_reduction <add>, %115, %cst_29 [1] : vector<16x16xf32> to vector<16xf32>
    %117 = vector.shape_cast %116 : vector<16xf32> to vector<16x1xf32>
    %118 = tpu.reciprocal %117 {approx = true} : vector<16x1xf32> -> vector<16x1xf32>
    %119 = vector.broadcast %118 : vector<16x1xf32> to vector<16x16xf32>
    %120 = arith.mulf %115, %119 : vector<16x16xf32>
    %121 = vector.extract_strided_slice %68 {offsets = [36, 0], sizes = [1, 16], strides = [1, 1]} : vector<37x16xf32> to vector<1x16xf32>
    %122 = vector.broadcast %121 : vector<1x16xf32> to vector<16x16xf32>
    %123 = arith.mulf %72, %122 : vector<16x16xf32>
    %cst_30 = arith.constant dense<0.000000e+00> : vector<16x16xf32>
    %124 = tpu.matmul %120, %123, %cst_30 {dimension_numbers = #tpu.dot_dimension_numbers<[1], [0], [0], [1], [0, 0, 1, 1], [], []>} : vector<16x16xf32>, vector<16x16xf32>, vector<16x16xf32> -> vector<16x16xf32>
    %125 = arith.addf %99, %124 : vector<16x16xf32>
    %126 = vector.broadcast %70 : vector<1x16xf32> to vector<16x16xf32>
    %127 = arith.addf %125, %126 : vector<16x16xf32>
    %cst_31 = arith.constant 0.000000e+00 : f32
    %128 = vector.broadcast %cst_31 : f32 to vector<16x16xf32>
    %129 = arith.maximumf %127, %128 : vector<16x16xf32>
    %130 = vector.extract_strided_slice %1 {offsets = [2, 0, 0], sizes = [1, 37, 16], strides = [1, 1, 1]} : vector<3x37x16xf32> to vector<1x37x16xf32>
    %131 = vector.shape_cast %130 : vector<1x37x16xf32> to vector<37x16xf32>
    %132 = vector.extract_strided_slice %131 {offsets = [0, 0], sizes = [16, 16], strides = [1, 1]} : vector<37x16xf32> to vector<16x16xf32>
    %133 = vector.extract_strided_slice %131 {offsets = [18, 0], sizes = [1, 16], strides = [1, 1]} : vector<37x16xf32> to vector<1x16xf32>
    %134 = vector.extract_strided_slice %131 {offsets = [19, 0], sizes = [16, 2], strides = [1, 1]} : vector<37x16xf32> to vector<16x2xf32>
    %cst_32 = arith.constant dense<0.000000e+00> : vector<16x16xf32>
    %135 = tpu.matmul %129, %132, %cst_32 {dimension_numbers = #tpu.dot_dimension_numbers<[1], [0], [0], [1], [0, 0, 1, 1], [], []>} : vector<16x16xf32>, vector<16x16xf32>, vector<16x16xf32> -> vector<16x16xf32>
    %cst_33 = arith.constant dense<0.000000e+00> : vector<16x2xf32>
    %136 = tpu.matmul %135, %134, %cst_33 {dimension_numbers = #tpu.dot_dimension_numbers<[1], [0], [0], [1], [0, 0, 1, 1], [], []>} : vector<16x16xf32>, vector<16x2xf32>, vector<16x2xf32> -> vector<16x2xf32>
    %137 = tpu.transpose %136, [1, 0] : vector<16x2xf32> -> vector<2x16xf32>
    %138 = vector.extract_strided_slice %136 {offsets = [0, 0], sizes = [16, 1], strides = [1, 1]} : vector<16x2xf32> to vector<16x1xf32>
    %139 = vector.extract_strided_slice %137 {offsets = [1, 0], sizes = [1, 16], strides = [1, 1]} : vector<2x16xf32> to vector<1x16xf32>
    %140 = vector.broadcast %138 : vector<16x1xf32> to vector<16x16xf32>
    %141 = vector.broadcast %139 : vector<1x16xf32> to vector<16x16xf32>
    %142 = arith.addf %140, %141 : vector<16x16xf32>
    %cst_34 = arith.constant 0.000000e+00 : f32
    %143 = vector.broadcast %cst_34 : f32 to vector<16x16xf32>
    %144 = arith.cmpf ogt, %142, %143 : vector<16x16xf32>
    %cst_35 = arith.constant 2.000000e-01 : f32
    %145 = vector.broadcast %cst_35 : f32 to vector<16x16xf32>
    %146 = arith.mulf %145, %142 : vector<16x16xf32>
    %147 = arith.select %144, %142, %146 : vector<16x16xi1>, vector<16x16xf32>
    %148 = arith.addf %147, %0 : vector<16x16xf32>
    %cst_36 = arith.constant dense<0xFF800000> : vector<16xf32>
    %149 = vector.multi_reduction <maximumf>, %148, %cst_36 [1] : vector<16x16xf32> to vector<16xf32>
    %150 = vector.shape_cast %149 : vector<16xf32> to vector<16x1xf32>
    %151 = vector.broadcast %150 : vector<16x1xf32> to vector<16x16xf32>
    %152 = arith.subf %148, %151 : vector<16x16xf32>
    %153 = math.exp %152 : vector<16x16xf32>
    %cst_37 = arith.constant dense<0.000000e+00> : vector<16xf32>
    %154 = vector.multi_reduction <add>, %153, %cst_37 [1] : vector<16x16xf32> to vector<16xf32>
    %155 = vector.shape_cast %154 : vector<16xf32> to vector<16x1xf32>
    %156 = tpu.reciprocal %155 {approx = true} : vector<16x1xf32> -> vector<16x1xf32>
    %157 = vector.broadcast %156 : vector<16x1xf32> to vector<16x16xf32>
    %158 = arith.mulf %153, %157 : vector<16x16xf32>
    %159 = vector.extract_strided_slice %131 {offsets = [35, 0], sizes = [1, 16], strides = [1, 1]} : vector<37x16xf32> to vector<1x16xf32>
    %160 = vector.broadcast %159 : vector<1x16xf32> to vector<16x16xf32>
    %161 = arith.mulf %135, %160 : vector<16x16xf32>
    %cst_38 = arith.constant dense<0.000000e+00> : vector<16x16xf32>
    %162 = tpu.matmul %158, %161, %cst_38 {dimension_numbers = #tpu.dot_dimension_numbers<[1], [0], [0], [1], [0, 0, 1, 1], [], []>} : vector<16x16xf32>, vector<16x16xf32>, vector<16x16xf32> -> vector<16x16xf32>
    %163 = vector.broadcast %133 : vector<1x16xf32> to vector<16x16xf32>
    %164 = arith.addf %162, %163 : vector<16x16xf32>
    %165 = vector.extract_strided_slice %164 {offsets = [0, 0], sizes = [16, 15], strides = [1, 1]} : vector<16x16xf32> to vector<16x15xf32>
    %c0_39 = arith.constant 0 : index
    %c0_40 = arith.constant 0 : index
    %c0_41 = arith.constant 0 : index
    %166 = vector.load %arg4[%c0_39, %c0_40, %c0_41] : memref<1x16x15xf32, #tpu.memory_space<vmem>>, vector<1x16x15xf32>
    %167 = vector.shape_cast %166 : vector<1x16x15xf32> to vector<16x15xf32>
    %168 = vector.shape_cast %165 : vector<16x15xf32> to vector<1x16x15xf32>
    tpu.vector_store %arg4[%c0_39, %c0_40, %c0_41], %168 {strides = array<i32>} : memref<1x16x15xf32, #tpu.memory_space<vmem>>, vector<1x16x15xf32>,
    return
  }
  func.func @transform_0(%arg0: i32) -> (i32, i32, i32) {
    %c0_i32 = arith.constant 0 : i32
    %c0_i32_0 = arith.constant 0 : i32
    %c0_i32_1 = arith.constant 0 : i32
    return %arg0, %c0_i32, %c0_i32_0 : i32, i32, i32
  }
  func.func @transform_1(%arg0: i32) -> (i32, i32) {
    %c0_i32 = arith.constant 0 : i32
    %c0_i32_0 = arith.constant 0 : i32
    %c0_i32_1 = arith.constant 0 : i32
    return %c0_i32, %c0_i32_0 : i32, i32
  }
  func.func @transform_2(%arg0: i32) -> (i32, i32, i32) {
    %c0_i32 = arith.constant 0 : i32
    %c0_i32_0 = arith.constant 0 : i32
    %c0_i32_1 = arith.constant 0 : i32
    %c0_i32_2 = arith.constant 0 : i32
    return %c0_i32, %c0_i32_0, %c0_i32_1 : i32, i32, i32
  }
  func.func @transform_3(%arg0: i32) -> (i32, i32, i32) {
    %c0_i32 = arith.constant 0 : i32
    %c0_i32_0 = arith.constant 0 : i32
    %c0_i32_1 = arith.constant 0 : i32
    return %arg0, %c0_i32, %c0_i32_0 : i32, i32, i32
  }
}

</mosaic_0001>

<bundles_post_ra>
// kernel: tpu_custom_call.1
= control target key start
LH: loop header
LB: loop body
LE: loop exit
PB: predicated region body
PF: predicated region fallthrough
CT: control target
= control target key end

     0   :  { %s1798_s12 = smov 0   ;;  %s1981_s0 = inlined_call_operand.vmem [shape: f32[8,16,18], index: 0, kind: input, shape index: {}]   ;;  %s1982_s1 = inlined_call_operand.vmem [shape: f32[16,16], index: 1, kind: input, shape index: {}]   ;;  %s1983_s2 = inlined_call_operand.vmem [shape: f32[3,37,16], index: 2, kind: input, shape index: {}]   ;;  %s1984_s3 = inlined_call_operand.vmem [shape: f32[8,16,15], index: 3, kind: output, shape index: {}]  }
   0x1 LB: > { %s1547_s13 = sadd.s32 4294967295, %s1774_s12   ;;  %p1551_p0 = scmp.ge.s32.totalorder %s1774_s12, 1  ;;  %s1774_s12 = sphi %s1798_s12, %s13_s12  }
   0x2   : > { %p137_p1 = scmp.lt.s32.totalorder %s1774_s12, 9 }
   0x4   : > { %p138_p2 = pnand %p1551_p0, %p137_p1 }
   0x5   : > { %p161_p3 = scmp.lt.s32.totalorder (!%p138_p2), %s1547_s13, 7 }
   0x6   : > { %141 = sbr.rel (%p138_p2) target bundleno = 3286 (0xcd6), region = 32 }
   0xb   : > { %v1809_v0 = vld [vmem:[%s1983_s2 + $0x10] sm:$0xff]  ;;  %vm197_vm0 = vcmask 1041408   ;;  %v174_v1 = vld [vmem:[%s1983_s2 + $0x8] sm:$0xff]  ;;  %v176_v2 = vld [vmem:[%s1983_s2 + $0x18] sm:$0xff]  ;;  %vm278_vm1 = vcmask 1044480   ;;  %s1986_s13 = smov (!%p161_p3, %s1547_s13), 7  ;;  %v410_v13 = vlaneseq }
   0xc   : > { %1628 = vmatprep.subr.msk.mxu0 %vm197_vm0, %v1809_v0  ;;  %v177_v3 = vld [vmem:[%s1983_s2 + $0x20] sm:$0x1f]  ;;  %v280_v5 = vrot.slane %v176_v2, 3  ;;  %s1581_s24 = sshll.u32 %s1986_s13, 4  ;;  %vm190_vm2 = vcmask 146432   ;;  %v279_v10 = vrot.slane %v1809_v0, 3 }
   0xd   : > { %1629 = vmatpush3.msk.msra.mxu0 %vm197_vm0, %v1809_v0  ;;  %v173_v4 = vld [vmem:[%s1983_s2] sm:$0xff]  ;;  %v282_v6 = vrot.slane %v177_v3, 3  ;;  %s165_s27 = scalar_lea.vmem %s1981_s0, %s1581_s24  ;;  %v1776_v12 = vmov 0   ;;  %v1838_v14 = vshrl.u32 %v410_v13, 7  ;;  %vm286_vm3 = vcmask 130048   ;;  %v1861_v39 = vld [vmem:[%s1982_s1 + $0x8] sm:$0xff]  ;;  %s170_s30 = scalar_lea.vmem %s1984_s3, %s1581_s24 }
   0xe   : > { %1630 = vmatprep.subr.mxu0 %v174_v1  ;;  %v188_v8 = vld [vmem:[%s165_s27] sm:$0xff]  ;;  %v189_v9 = vld [vmem:[%s165_s27 + $0x8] sm:$0xff]  ;;  %v281_v11 = vsel %vm278_vm1, %v279_v10, %v280_v5  ;;  %1720 = vset.pattern.permute.xlu1 %v1776_v12  ;;  %v1777_v27 = vmov 1   ;;  %vm1489_vm14 = vcmask 121856  }
   0xf   : > { %1631 = vmatpush3.msra.mxu0 %v174_v1  ;;  %v283_v7 = vsel %vm278_vm1, %v280_v5, %v282_v6  ;;  %1634 = vmatprep.mubr.msk.f32.mxu0 %vm190_vm2, %v188_v8  ;;  %v1841_v15 = vsub.s32 3, %v1838_v14  ;;  %v498_v16 = vsub.s32 4, %v1838_v14  ;;  %v1854_v31 = vsub.s32 2, %v1838_v14  ;;  %v1866_v44 = vld [vmem:[%s1982_s1] sm:$0xff] }
  0x10   : > { %1632 = vmatprep.subr.mxu0 %v173_v4  ;;  %1637 = vmatprep.subr.mxu1 %v283_v7 }
  0x11   : > { %1633 = vmatpush3.msra.mxu0 %v173_v4  ;;  %1638 = vmatpush3.msra.mxu1 %v283_v7  ;;  %v449_v17 = vrot.slane %v177_v3, %v1841_v15  ;;  %v499_v18 = vrot.slane %v177_v3, %v498_v16 }
  0x12   : > { %1635 = vmatmul.mubr.msk.f32.vlgmr.msra.gmra.mxu0 %vm190_vm2, %v189_v9  ;;  %1639 = vmatprep.subr.mxu1 %v281_v11 }
  0x13   : > { %1640 = vmatpush3.msra.mxu1 %v281_v11  ;;  %1718 = vset.pattern.permute.xlu0 %v1776_v12 }
  0xd2   : > { %v1636_v19 = vpop.f32.mrf.mxu0 }
  0xd3   : > { %v451_v20 = vmul.f32 %v1636_v19, %v449_v17  ;;  %v501_v21 = vmul.f32 %v1636_v19, %v499_v18 }
  0xd4   : > { %v267_v22 = vpop.f32.mrf.mxu0 }
  0xd5   : > { %v450_v23 = vmul.f32 %v449_v17, %v267_v22  ;;  %v500_v24 = vmul.f32 %v499_v18, %v267_v22  ;;  %1641 = vmatprep.mubr.msk.f32.mxu1 %vm286_vm3, %v267_v22  ;;  %1644 = vmatprep.subr.mxu1 %v501_v21 }
  0xd6   : > { %1651 = vmatprep.subr.mxu0 %v451_v20  ;;  %1642 = vmatmul.mubr.msk.f32.vlgmr.msra.gmra.mxu1 %vm286_vm3, %v1636_v19 }
  0xd7   : > { %1645 = vmatpush3.msra.mxu1 %v501_v21  ;;  %1652 = vmatpush3.msra.mxu0 %v451_v20 }
  0xd8   : > { %1646 = vmatprep.subr.mxu1 %v500_v24  ;;  %1653 = vmatprep.subr.mxu0 %v450_v23 }
  0xd9   : > { %1647 = vmatpush3.msra.mxu1 %v500_v24  ;;  %1654 = vmatpush3.msra.mxu0 %v450_v23 }
 0x196   : > { %v1643_v25 = vpop.f32.mrf.mxu1 }
 0x197   : > { %407 = vperm.xlu1 %1720, %v1643_v25  }
 0x198   : > { %v359_v26 = vpop.f32.mrf.mxu1 }
 0x199   : > { %402 = vperm.xlu0 %1718, %v359_v26  }
 0x19b   : > { %1721 = vset.pattern.permute.xlu1 %v1777_v27 }
 0x19c   : > { %457 = vperm.xlu1 %1721, %v1643_v25  }
 0x19d   : > { %1719 = vset.pattern.permute.xlu0 %v1777_v27 }
 0x19e   : > { %453 = vperm.xlu0 %1719, %v359_v26  }
 0x1a2   : > { %1723 = vset.pattern.permute.xlu0 %v1776_v12 }
 0x1c5   : > { %368 = vxpose.xlu1.b32.start [1/2] (short) (narrow) %v359_v26, 8 }
 0x1c9   : > { %369 = vxpose.xlu1.b32.end [2/2] (short) (narrow) %v1643_v25, 8 }
 0x1e7   : > { %1722 = vset.pattern.permute.xlu1 %v1776_v12 }
 0x212   : > { %v408_v28 = vpop.permute.xlu1 %407 }
 0x214   : > { %v403_v29 = vpop.permute.xlu0 %402 }
 0x217   : > { %v458_v30 = vpop.permute.xlu1 %457 }
 0x219   : > { %v454_v35 = vpop.permute.xlu0 %453 }
 0x241   : > { %v384_v32 = vpop.trf.xlu1 }
 0x242   : > { %v413_v33 = vrot.slane %v384_v32, %v1854_v31  ;;  %v463_v34 = vrot.slane %v384_v32, %v1841_v15 }
 0x244   : > { %v414_v36 = vadd.f32 %v413_v33, %v403_v29  ;;  %v415_v37 = vadd.f32 %v413_v33, %v408_v28  ;;  %v464_v38 = vadd.f32 %v463_v34, %v454_v35  ;;  %v465_v42 = vadd.f32 %v463_v34, %v458_v30  ;;  %v179_v33 = vld [vmem:[%s1983_s2 + $0x30] sm:$0xff]  ;;  %v178_v34 = vld [vmem:[%s1983_s2 + $0x28] sm:$0xff]  ;;  %v181_v35 = vld [vmem:[%s1983_s2 + $0x40] sm:$0xff] }
 0x245   : > { %1658 = vmatprep.subr.mxu1 %v179_v33 }
 0x246   : > { %vm417_vm4 = vcmp.gt.f32.partialorder %v415_v37, 0.0  ;;  %v419_v40 = vmul.f32 0.2, %v415_v37  ;;  %vm416_vm5 = vcmp.gt.f32.partialorder %v414_v36, 0.0  ;;  %v418_v41 = vmul.f32 0.2, %v414_v36 }
 0x247   : > { %v468_v46 = vmul.f32 0.2, %v464_v38  ;;  %vm466_vm6 = vcmp.gt.f32.partialorder %v464_v38, 0.0  ;;  %v469_v51 = vmul.f32 0.2, %v465_v42  ;;  %vm467_vm7 = vcmp.gt.f32.partialorder %v465_v42, 0.0 }
 0x248   : > { %v421_v43 = vsel %vm417_vm4, %v415_v37, %v419_v40  ;;  %v420_v45 = vsel %vm416_vm5, %v414_v36, %v418_v41  ;;  %v182_v36 = vld [vmem:[%s1983_s2 + $0x48] sm:$0x1f]  ;;  %v757_v37 = vrot.slane %v181_v35, 3 }
 0x249   : > { %v423_v47 = vadd.f32 %v421_v43, %v1861_v39  ;;  %v422_v49 = vadd.f32 %v420_v45, %v1866_v44  ;;  %v470_v50 = vsel %vm466_vm6, %v464_v38, %v468_v46  ;;  %v471_v54 = vsel %vm467_vm7, %v465_v42, %v469_v51 }
 0x24a   : > { %v472_v53 = vadd.f32 %v470_v50, %v1866_v44  ;;  %v473_v56 = vadd.f32 %v471_v54, %v1861_v39  ;;  %v759_v38 = vrot.slane %v182_v36, 3  ;;  %v667_v43 = vrot.slane %v1809_v0, %v1854_v31 }
 0x24b   : > { %v427_v48 = vsel %vm286_vm3, %v423_v47, -inf  ;;  %v424_v52 = vsel %vm286_vm3, %v422_v49, -inf }
 0x24c   : > { %428 = vmax.xlane.f32.xlu0 %v427_v48  ;;  %v474_v55 = vsel %vm286_vm3, %v472_v53, -inf  ;;  %v477_v57 = vsel %vm286_vm3, %v473_v56, -inf  ;;  %v760_v40 = vsel %vm278_vm1, %v757_v37, %v759_v38 }
 0x24d   : > { %1665 = vmatprep.subr.mxu0 %v760_v40 }
 0x250   : > { %425 = vmax.xlane.f32.xlu0 %v424_v52 }
 0x254   : > { %475 = vmax.xlane.f32.xlu0 %v474_v55  ;;  %v925_v55 = vrot.slane %v182_v36, %v1841_v15 }
 0x258   : > { %478 = vmax.xlane.f32.xlu0 %v477_v57 }
 0x2d5   : > { %v429_v58 = vpop.xlane.xlu0 %428 }
 0x2d6   : > { %v431_v59 = vsub.f32 %v423_v47, %v429_v58 }
 0x2d8   : > { %v434_v60 = vmul.f32 1.442695, %v431_v59 }
 0x2d9   : > { %v426_v61 = vpop.xlane.xlu0 %425 }
 0x2da   : > { %1728 = vpow2.f32 %v434_v60  ;;  %v430_v62 = vsub.f32 %v422_v49, %v426_v61 }
 0x2dc   : > { %v432_v63 = vmul.f32 1.442695, %v430_v62 }
 0x2dd   : > { %v476_v1 = vpop.xlane.xlu0 %475 }
 0x2de   : > { %1730 = vpow2.f32 %v432_v63  ;;  %v480_v2 = vsub.f32 %v472_v53, %v476_v1  ;;  %v1904_v53 = vld [vmem:[%s1983_s2 + $0x38] sm:$0xff] }
 0x2df   : > { %v756_v54 = vrot.slane %v1904_v53, 3 }
 0x2e0   : > { %v482_v3 = vmul.f32 1.442695, %v480_v2 }
 0x2e1   : > { %v479_v4 = vpop.xlane.xlu0 %478  ;;  %v758_v0 = vsel %vm278_vm1, %v756_v54, %v757_v37 }
 0x2e2   : > { %1732 = vpow2.f32 %v482_v3  ;;  %v481_v5 = vsub.f32 %v473_v56, %v479_v4  ;;  %v975_v56 = vrot.slane %v182_v36, %v498_v16 }
 0x2e4   : > { %v484_v6 = vmul.f32 1.442695, %v481_v5 }
 0x2e6   : > { %1734 = vpow2.f32 %v484_v6 }
 0x2e7   : > { %v1729_v7 = vpop.eup %1728 }
 0x2e8   : > { %v439_v8 = vsel %vm286_vm3, %v1729_v7, 0.0 }
 0x2e9   : > { %440 = vadd.xlane.f32.xlu0 %v439_v8 }
 0x2eb   : > { %v1731_v9 = vpop.eup %1730 }
 0x2ec   : > { %v436_v10 = vsel %vm286_vm3, %v1731_v9, 0.0 }
 0x2ed   : > { %437 = vadd.xlane.f32.xlu1 %v436_v10 }
 0x2ef   : > { %v1733_v11 = vpop.eup %1732 }
 0x2f0   : > { %v486_v13 = vsel %vm286_vm3, %v1733_v11, 0.0 }
 0x2f1   : > { %487 = vadd.xlane.f32.xlu0 %v486_v13 }
 0x2f3   : > { %v1735_v17 = vpop.eup %1734 }
 0x2f4   : > { %v489_v18 = vsel %vm286_vm3, %v1735_v17, 0.0 }
 0x2f5   : > { %490 = vadd.xlane.f32.xlu0 %v489_v18 }
 0x372   : > { %v441_v19 = vpop.xlane.xlu0 %440 }
 0x373   : > { %1736 = vrcp.f32 %v441_v19 }
 0x376   : > { %v438_v20 = vpop.xlane.xlu1 %437 }
 0x377   : > { %1738 = vrcp.f32 %v438_v20 }
 0x37a   : > { %v488_v21 = vpop.xlane.xlu0 %487 }
 0x37b   : > { %1740 = vrcp.f32 %v488_v21 }
 0x37e   : > { %v491_v22 = vpop.xlane.xlu0 %490 }
 0x37f   : > { %1742 = vrcp.f32 %v491_v22 }
 0x380   : > { %v1737_v23 = vpop.eup %1736 }
 0x381   : > { %v445_v26 = vmul.f32 %v1737_v23, %v1729_v7 }
 0x384   : > { %v1739_v24 = vpop.eup %1738 }
 0x385   : > { %v444_v25 = vmul.f32 %v1739_v24, %v1731_v9 }
 0x387   : > { %1655 = vmatprep.mubr.msk.f32.mxu0 %vm286_vm3, %v444_v25 }
 0x388   : > { %v1741_v28 = vpop.eup %1740  ;;  %1656 = vmatmul.mubr.msk.f32.vlgmr.msra.gmra.mxu0 %vm286_vm3, %v445_v26 }
 0x389   : > { %v494_v29 = vmul.f32 %v1741_v28, %v1733_v11  ;;  %1666 = vmatpush3.msra.mxu0 %v760_v40 }
 0x38a   : > { %1667 = vmatprep.subr.mxu0 %v758_v0 }
 0x38b   : > { %1648 = vmatprep.mubr.msk.f32.mxu1 %vm286_vm3, %v494_v29  ;;  %1668 = vmatpush3.msra.mxu0 %v758_v0 }
 0x38c   : > { %v1743_v30 = vpop.eup %1742 }
 0x38d   : > { %v495_v32 = vmul.f32 %v1743_v30, %v1735_v17 }
 0x38f   : > { %1649 = vmatmul.mubr.msk.f32.vlgmr.msra.gmra.mxu1 %vm286_vm3, %v495_v32 }
 0x390   : > { %1659 = vmatpush3.msra.mxu1 %v179_v33 }
 0x391   : > { %1660 = vmatprep.subr.mxu1 %v178_v34 }
 0x392   : > { %1661 = vmatpush3.msra.mxu1 %v178_v34 }
 0x448   : > { %v1657_v41 = vpop.f32.mrf.mxu0 }
 0x44a   : > { %v655_v46 = vpop.f32.mrf.mxu0 }
 0x44f   : > { %v1650_v42 = vpop.f32.mrf.mxu1 }
 0x450   : > { %v661_v45 = vadd.f32 %v1657_v41, %v1650_v42 }
 0x451   : > { %v574_v47 = vpop.f32.mrf.mxu1 }
 0x452   : > { %v656_v48 = vadd.f32 %v655_v46, %v574_v47  ;;  %v669_v49 = vadd.f32 %v667_v43, %v661_v45 }
 0x454   : > { %v668_v50 = vadd.f32 %v667_v43, %v656_v48  ;;  %v671_v52 = vmax.f32 %v669_v49, 0.0 }
 0x456   : > { %v670_v51 = vmax.f32 %v668_v50, 0.0 }
 0x458   : > { %1662 = vmatprep.mubr.msk.f32.mxu1 %vm286_vm3, %v670_v51 }
 0x459   : > { %1663 = vmatmul.mubr.msk.f32.vlgmr.msra.gmra.mxu1 %vm286_vm3, %v671_v52 }
 0x519   : > { %v1664_v57 = vpop.f32.mrf.mxu1 }
 0x51a   : > { %v927_v58 = vmul.f32 %v1664_v57, %v925_v55  ;;  %v977_v59 = vmul.f32 %v1664_v57, %v975_v56 }
 0x51b   : > { %v744_v60 = vpop.f32.mrf.mxu1 }
 0x51c   : > { %v926_v61 = vmul.f32 %v925_v55, %v744_v60  ;;  %v976_v62 = vmul.f32 %v975_v56, %v744_v60  ;;  %1669 = vmatprep.mubr.msk.f32.mxu0 %vm286_vm3, %v744_v60  ;;  %1672 = vmatprep.subr.mxu1 %v977_v59 }
 0x51d   : > { %1679 = vmatprep.subr.mxu0 %v927_v58  ;;  %1670 = vmatmul.mubr.msk.f32.vlgmr.msra.gmra.mxu0 %vm286_vm3, %v1664_v57 }
 0x51e   : > { %1673 = vmatpush3.msra.mxu1 %v977_v59  ;;  %1680 = vmatpush3.msra.mxu0 %v927_v58 }
 0x51f   : > { %1674 = vmatprep.subr.mxu1 %v976_v62  ;;  %1681 = vmatprep.subr.mxu0 %v926_v61 }
 0x520   : > { %1675 = vmatpush3.msra.mxu1 %v976_v62  ;;  %1682 = vmatpush3.msra.mxu0 %v926_v61 }
 0x5dd   : > { %v1671_v63 = vpop.f32.mrf.mxu0 }
 0x5de   : > { %883 = vperm.xlu1 %1722, %v1671_v63  }
 0x5df   : > { %v835_v16 = vpop.f32.mrf.mxu0 }
 0x5e0   : > { %878 = vperm.xlu0 %1723, %v835_v16  }
 0x5e2   : > { %1725 = vset.pattern.permute.xlu1 %v1777_v27 }
 0x5e3   : > { %929 = vperm.xlu1 %1725, %v835_v16  }
 0x5e4   : > { %1724 = vset.pattern.permute.xlu0 %v1777_v27 }
 0x5e5   : > { %933 = vperm.xlu0 %1724, %v1671_v63  }
 0x5e9   : > { %1726 = vset.pattern.permute.xlu0 %v1776_v12 }
 0x60c   : > { %844 = vxpose.xlu1.b32.start [1/2] (short) (narrow) %v835_v16, 8 }
 0x610   : > { %845 = vxpose.xlu1.b32.end [2/2] (short) (narrow) %v1671_v63, 8 }
 0x62e   : > { %1727 = vset.pattern.permute.xlu1 %v1776_v12 }
 0x659   : > { %v884_v1 = vpop.permute.xlu1 %883 }
 0x65b   : > { %v879_v3 = vpop.permute.xlu0 %878 }
 0x65e   : > { %v930_v2 = vpop.permute.xlu1 %929 }
 0x660   : > { %v934_v11 = vpop.permute.xlu0 %933 }
 0x688   : > { %v860_v4 = vpop.trf.xlu1 }
 0x689   : > { %v889_v5 = vrot.slane %v860_v4, %v1854_v31  ;;  %v939_v6 = vrot.slane %v860_v4, %v1841_v15  ;;  %v186_v4 = vld [vmem:[%s1983_s2 + $0x68] sm:$0xff] }
 0x68b   : > { %v890_v7 = vadd.f32 %v889_v5, %v879_v3  ;;  %v891_v8 = vadd.f32 %v889_v5, %v884_v1  ;;  %v940_v9 = vadd.f32 %v939_v6, %v930_v2  ;;  %v941_v13 = vadd.f32 %v939_v6, %v934_v11  ;;  %v184_v2 = vld [vmem:[%s1983_s2 + $0x58] sm:$0xff]  ;;  %v183_v3 = vld [vmem:[%s1983_s2 + $0x50] sm:$0xff] }
 0x68c   : > { %1686 = vmatprep.subr.mxu1 %v184_v2  ;;  %v187_v5 = vld [vmem:[%s1983_s2 + $0x70] sm:$0x1f]  ;;  %v1233_v6 = vrot.slane %v186_v4, 3 }
 0x68d   : > { %vm893_vm8 = vcmp.gt.f32.partialorder %v891_v8, 0.0  ;;  %v895_v27 = vmul.f32 0.2, %v891_v8  ;;  %vm892_vm9 = vcmp.gt.f32.partialorder %v890_v7, 0.0  ;;  %v894_v10 = vmul.f32 0.2, %v890_v7 }
 0x68e   : > { %v944_v12 = vmul.f32 0.2, %v940_v9  ;;  %vm942_vm10 = vcmp.gt.f32.partialorder %v940_v9, 0.0  ;;  %v945_v23 = vmul.f32 0.2, %v941_v13  ;;  %vm943_vm11 = vcmp.gt.f32.partialorder %v941_v13, 0.0 }
 0x68f   : > { %v897_v17 = vsel %vm893_vm8, %v891_v8, %v895_v27  ;;  %v896_v18 = vsel %vm892_vm9, %v890_v7, %v894_v10  ;;  %v1235_v7 = vrot.slane %v187_v5, 3  ;;  %v1143_v10 = vrot.slane %v1904_v53, %v1854_v31 }
 0x690   : > { %v899_v19 = vadd.f32 %v897_v17, %v1861_v39  ;;  %v898_v21 = vadd.f32 %v896_v18, %v1866_v44  ;;  %v946_v22 = vsel %vm942_vm10, %v940_v9, %v944_v12  ;;  %v947_v26 = vsel %vm943_vm11, %v941_v13, %v945_v23 }
 0x691   : > { %v948_v25 = vadd.f32 %v946_v22, %v1866_v44  ;;  %v949_v29 = vadd.f32 %v947_v26, %v1861_v39  ;;  %v1236_v8 = vsel %vm278_vm1, %v1233_v6, %v1235_v7  ;;  %v1955_v22 = vld [vmem:[%s1983_s2 + $0x60] sm:$0xff] }
 0x692   : > { %v903_v20 = vsel %vm286_vm3, %v899_v19, -inf  ;;  %v900_v24 = vsel %vm286_vm3, %v898_v21, -inf  ;;  %1693 = vmatprep.subr.mxu0 %v1236_v8  ;;  %v1232_v23 = vrot.slane %v1955_v22, 3 }
 0x693   : > { %904 = vmax.xlane.f32.xlu0 %v903_v20  ;;  %v950_v28 = vsel %vm286_vm3, %v948_v25, -inf  ;;  %v953_v30 = vsel %vm286_vm3, %v949_v29, -inf }
 0x694   : > { %v1234_v53 = vsel %vm278_vm1, %v1232_v23, %v1233_v6 }
 0x697   : > { %901 = vmax.xlane.f32.xlu0 %v900_v24  ;;  %v1401_v24 = vrot.slane %v187_v5, %v1841_v15  ;;  %v1364_v15 = vsub.s32 1, %v1838_v14 }
 0x69b   : > { %951 = vmax.xlane.f32.xlu0 %v950_v28 }
 0x69f   : > { %954 = vmax.xlane.f32.xlu0 %v953_v30 }
 0x71c   : > { %v905_v32 = vpop.xlane.xlu0 %904 }
 0x71d   : > { %v907_v33 = vsub.f32 %v899_v19, %v905_v32 }
 0x71f   : > { %v910_v34 = vmul.f32 1.442695, %v907_v33 }
 0x720   : > { %v902_v35 = vpop.xlane.xlu0 %901 }
 0x721   : > { %1744 = vpow2.f32 %v910_v34  ;;  %v906_v36 = vsub.f32 %v898_v21, %v902_v35 }
 0x723   : > { %v908_v37 = vmul.f32 1.442695, %v906_v36 }
 0x724   : > { %v952_v38 = vpop.xlane.xlu0 %951 }
 0x725   : > { %1746 = vpow2.f32 %v908_v37  ;;  %v956_v40 = vsub.f32 %v948_v25, %v952_v38 }
 0x727   : > { %v958_v41 = vmul.f32 1.442695, %v956_v40 }
 0x728   : > { %v955_v42 = vpop.xlane.xlu0 %954 }
 0x729   : > { %1748 = vpow2.f32 %v958_v41  ;;  %v957_v43 = vsub.f32 %v949_v29, %v955_v42 }
 0x72b   : > { %v960_v45 = vmul.f32 1.442695, %v957_v43 }
 0x72d   : > { %1750 = vpow2.f32 %v960_v45 }
 0x72e   : > { %v1745_v46 = vpop.eup %1744 }
 0x72f   : > { %v915_v47 = vsel %vm286_vm3, %v1745_v46, 0.0 }
 0x730   : > { %916 = vadd.xlane.f32.xlu0 %v915_v47 }
 0x732   : > { %v1747_v48 = vpop.eup %1746 }
 0x733   : > { %v912_v49 = vsel %vm286_vm3, %v1747_v48, 0.0 }
 0x734   : > { %913 = vadd.xlane.f32.xlu1 %v912_v49 }
 0x736   : > { %v1749_v50 = vpop.eup %1748 }
 0x737   : > { %v962_v51 = vsel %vm286_vm3, %v1749_v50, 0.0 }
 0x738   : > { %963 = vadd.xlane.f32.xlu0 %v962_v51 }
 0x73a   : > { %v1751_v52 = vpop.eup %1750 }
 0x73b   : > { %v965_v54 = vsel %vm286_vm3, %v1751_v52, 0.0 }
 0x73c   : > { %966 = vadd.xlane.f32.xlu0 %v965_v54 }
 0x7b9   : > { %v917_v0 = vpop.xlane.xlu0 %916 }
 0x7ba   : > { %1752 = vrcp.f32 %v917_v0 }
 0x7bd   : > { %v914_v55 = vpop.xlane.xlu1 %913 }
 0x7be   : > { %1754 = vrcp.f32 %v914_v55 }
 0x7c1   : > { %v964_v56 = vpop.xlane.xlu0 %963 }
 0x7c2   : > { %1756 = vrcp.f32 %v964_v56 }
 0x7c5   : > { %v967_v57 = vpop.xlane.xlu0 %966 }
 0x7c6   : > { %1758 = vrcp.f32 %v967_v57 }
 0x7c7   : > { %v1753_v58 = vpop.eup %1752 }
 0x7c8   : > { %v921_v61 = vmul.f32 %v1753_v58, %v1745_v46 }
 0x7cb   : > { %v1755_v59 = vpop.eup %1754 }
 0x7cc   : > { %v920_v60 = vmul.f32 %v1755_v59, %v1747_v48 }
 0x7ce   : > { %1683 = vmatprep.mubr.msk.f32.mxu0 %vm286_vm3, %v920_v60 }
 0x7cf   : > { %v1757_v62 = vpop.eup %1756  ;;  %1684 = vmatmul.mubr.msk.f32.vlgmr.msra.gmra.mxu0 %vm286_vm3, %v921_v61 }
 0x7d0   : > { %v970_v63 = vmul.f32 %v1757_v62, %v1749_v50  ;;  %1694 = vmatpush3.msra.mxu0 %v1236_v8  ;;  %v1407_v62 = vrot.slane %v1955_v22, %v1854_v31 }
 0x7d1   : > { %1695 = vmatprep.subr.mxu0 %v1234_v53 }
 0x7d2   : > { %1676 = vmatprep.mubr.msk.f32.mxu1 %vm286_vm3, %v970_v63  ;;  %1696 = vmatpush3.msra.mxu0 %v1234_v53 }
 0x7d3   : > { %v1759_v16 = vpop.eup %1758 }
 0x7d4   : > { %v971_v1 = vmul.f32 %v1759_v16, %v1751_v52 }
 0x7d6   : > { %1677 = vmatmul.mubr.msk.f32.vlgmr.msra.gmra.mxu1 %vm286_vm3, %v971_v1 }
 0x7d7   : > { %1687 = vmatpush3.msra.mxu1 %v184_v2 }
 0x7d8   : > { %1688 = vmatprep.subr.mxu1 %v183_v3 }
 0x7d9   : > { %1689 = vmatpush3.msra.mxu1 %v183_v3 }
 0x88f   : > { %v1685_v9 = vpop.f32.mrf.mxu0 }
 0x891   : > { %v1131_v13 = vpop.f32.mrf.mxu0 }
 0x896   : > { %v1678_v27 = vpop.f32.mrf.mxu1 }
 0x897   : > { %v1137_v11 = vadd.f32 %v1685_v9, %v1678_v27 }
 0x898   : > { %v1050_v17 = vpop.f32.mrf.mxu1 }
 0x899   : > { %v1132_v18 = vadd.f32 %v1131_v13, %v1050_v17  ;;  %v1145_v12 = vadd.f32 %v1143_v10, %v1137_v11 }
 0x89b   : > { %v1144_v19 = vadd.f32 %v1143_v10, %v1132_v18  ;;  %v1147_v21 = vmax.f32 %v1145_v12, 0.0 }
 0x89d   : > { %v1146_v20 = vmax.f32 %v1144_v19, 0.0 }
 0x89f   : > { %1690 = vmatprep.mubr.msk.f32.mxu1 %vm286_vm3, %v1146_v20 }
 0x8a0   : > { %1691 = vmatmul.mubr.msk.f32.vlgmr.msra.gmra.mxu1 %vm286_vm3, %v1147_v21 }
 0x960   : > { %v1692_v25 = vpop.f32.mrf.mxu1 }
 0x961   : > { %v1403_v26 = vmul.f32 %v1692_v25, %v1401_v24 }
 0x962   : > { %v1220_v28 = vpop.f32.mrf.mxu1 }
 0x963   : > { %v1402_v29 = vmul.f32 %v1401_v24, %v1220_v28  ;;  %1697 = vmatprep.mubr.msk.f32.mxu0 %vm286_vm3, %v1220_v28  ;;  %1700 = vmatprep.subr.mxu1 %v1403_v26 }
 0x964   : > { %1698 = vmatmul.mubr.msk.f32.vlgmr.msra.gmra.mxu0 %vm286_vm3, %v1692_v25  ;;  %1701 = vmatpush3.msra.mxu1 %v1403_v26 }
 0x965   : > { %1702 = vmatprep.subr.mxu1 %v1402_v29 }
 0x966   : > { %1703 = vmatpush3.msra.mxu1 %v1402_v29 }
 0xa24   : > { %v1699_v30 = vpop.f32.mrf.mxu0 }
 0xa25   : > { %1359 = vperm.xlu1 %1727, %v1699_v30  }
 0xa26   : > { %v1311_v32 = vpop.f32.mrf.mxu0 }
 0xa27   : > { %1354 = vperm.xlu0 %1726, %v1311_v32  }
 0xa4e   : > { %1320 = vxpose.xlu1.b32.start [1/2] (short) (narrow) %v1311_v32, 8 }
 0xa52   : > { %1321 = vxpose.xlu1.b32.end [2/2] (short) (narrow) %v1699_v30, 8 }
 0xaa0   : > { %v1360_v33 = vpop.permute.xlu1 %1359 }
 0xaa2   : > { %v1355_v36 = vpop.permute.xlu0 %1354 }
 0xaca   : > { %v1336_v34 = vpop.trf.xlu1 }
 0xacb   : > { %v1365_v35 = vrot.slane %v1336_v34, %v1364_v15 }
 0xacd   : > { %v1366_v37 = vadd.f32 %v1365_v35, %v1355_v36  ;;  %v1367_v38 = vadd.f32 %v1365_v35, %v1360_v33 }
 0xacf   : > { %v1370_v40 = vmul.f32 0.2, %v1366_v37  ;;  %v1371_v41 = vmul.f32 0.2, %v1367_v38  ;;  %vm1368_vm12 = vcmp.gt.f32.partialorder %v1366_v37, 0.0  ;;  %vm1369_vm13 = vcmp.gt.f32.partialorder %v1367_v38, 0.0 }
 0xad1   : > { %v1372_v42 = vsel %vm1368_vm12, %v1366_v37, %v1370_v40  ;;  %v1373_v43 = vsel %vm1369_vm13, %v1367_v38, %v1371_v41 }
 0xad2   : > { %v1374_v45 = vadd.f32 %v1372_v42, %v1866_v44  ;;  %v1375_v47 = vadd.f32 %v1373_v43, %v1861_v39 }
 0xad4   : > { %v1376_v46 = vsel %vm286_vm3, %v1374_v45, -inf  ;;  %v1379_v14 = vsel %vm286_vm3, %v1375_v47, -inf }
 0xad5   : > { %1377 = vmax.xlane.f32.xlu0 %v1376_v46 }
 0xad9   : > { %1380 = vmax.xlane.f32.xlu0 %v1379_v14 }
 0xb5e   : > { %v1378_v48 = vpop.xlane.xlu0 %1377 }
 0xb5f   : > { %v1382_v49 = vsub.f32 %v1374_v45, %v1378_v48 }
 0xb61   : > { %v1384_v50 = vmul.f32 1.442695, %v1382_v49 }
 0xb62   : > { %v1381_v51 = vpop.xlane.xlu0 %1380 }
 0xb63   : > { %1760 = vpow2.f32 %v1384_v50  ;;  %v1383_v52 = vsub.f32 %v1375_v47, %v1381_v51 }
 0xb65   : > { %v1386_v54 = vmul.f32 1.442695, %v1383_v52 }
 0xb67   : > { %1762 = vpow2.f32 %v1386_v54 }
 0xb70   : > { %v1761_v0 = vpop.eup %1760 }
 0xb71   : > { %v1388_v55 = vsel %vm286_vm3, %v1761_v0, 0.0 }
 0xb72   : > { %1389 = vadd.xlane.f32.xlu0 %v1388_v55 }
 0xb74   : > { %v1763_v44 = vpop.eup %1762 }
 0xb75   : > { %v1391_v39 = vsel %vm286_vm3, %v1763_v44, 0.0 }
 0xb76   : > { %1392 = vadd.xlane.f32.xlu0 %v1391_v39 }
 0xbfb   : > { %v1390_v56 = vpop.xlane.xlu0 %1389 }
 0xbfc   : > { %1764 = vrcp.f32 %v1390_v56 }
 0xbff   : > { %v1393_v57 = vpop.xlane.xlu0 %1392 }
 0xc00   : > { %1766 = vrcp.f32 %v1393_v57 }
 0xc09   : > { %v1765_v58 = vpop.eup %1764 }
 0xc0a   : > { %v1396_v59 = vmul.f32 %v1765_v58, %v1761_v0 }
 0xc0c   : > { %1704 = vmatprep.mubr.msk.f32.mxu1 %vm286_vm3, %v1396_v59 }
 0xc0d   : > { %v1767_v60 = vpop.eup %1766 }
 0xc0e   : > { %v1397_v61 = vmul.f32 %v1767_v60, %v1763_v44 }
 0xc10   : > { %1705 = vmatmul.mubr.msk.f32.vlgmr.msra.gmra.mxu1 %vm286_vm3, %v1397_v61 }
 0xcd0   : > { %v1706_v63 = vpop.f32.mrf.mxu1 }
 0xcd1   : > { %v1486_v16 = vadd.f32 %v1706_v63, %v1407_v62 }
 0xcd2   : > { %v1480_v1 = vpop.f32.mrf.mxu1 }
 0xcd3   : > { %1491 = vst.msk [vmem:[%s170_s30 + $0x8] sm:$0xff] %vm1489_vm14, %v1486_v16  ;;  %v1481_v2 = vadd.f32 %v1480_v1, %v1407_v62 }
 0xcd5   : > { %1490 = vst.msk [vmem:[%s170_s30] sm:$0xff] %vm1489_vm14, %v1481_v2 }
 0xcd6 PF: > { %s13_s12 = sadd.s32 1, %s1774_s12  }
 0xcd7   : > { %p10_p4 = scmp.ge.s32.totalorder %s13_s12, 10  }
 0xcd9   :  { %12 = sbr.rel (!%p10_p4) target bundleno = 1 (0x1), region = 62 }

</bundles_post_ra>
